<compile_context>
chip_gen: v6e
topology: v6e:2x2x1
jax: 0.10.0
libtpu: 0.0.40
codegen_flags: <defaults>
</compile_context>

<pallas_src>
import functools

import jax
import jax.numpy as jnp
from jax.experimental import pallas as pl
from jax.experimental.pallas import tpu as pltpu

_LANES = 512          # lane-dense last dim (multiple of 128)
_ROW_BLOCK_CAP = 512  # 512 x 512 x 4B = 1 MiB per f32 block


def _round_up(x, m):
    return ((x + m - 1) // m) * m


def _stats_kernel(w_ref, s1_ref, s2_ref):
    """Single-pass partial sums: s1 += sum(w, axis=0), s2 += sum(w*w, axis=0)."""
    @pl.when(pl.program_id(0) == 0)
    def _():
        s1_ref[...] = jnp.zeros_like(s1_ref)
        s2_ref[...] = jnp.zeros_like(s2_ref)

    w = w_ref[...].astype(jnp.float32)
    s1_ref[...] += jnp.sum(w, axis=0, keepdims=True)
    s2_ref[...] += jnp.sum(w * w, axis=0, keepdims=True)


def _quant_kernel(sc_ref, nt_ref, w_ref, o_ref, *, b):
    """Elementwise term-quantization.

    sc_ref (SMEM, f32[3]): [mean, 1/(std*alpha), alpha/(2^b-1)]
    nt_ref (SMEM, i32[1]): num_terms
    """
    mean = sc_ref[0]
    inv = sc_ref[1]        # 1 / (std * alpha)   (folded scalar)
    out_scale = sc_ref[2]  # alpha * sf          (folded scalar)
    num_terms = nt_ref[0]

    levels = (1 << b) - 1

    w = w_ref[...].astype(jnp.float32)
    x = (w - mean) * inv

    # sign / abs via sign-bit masking; clamp(-1,1)+abs == abs followed by min(.,1)
    # (saves one VPU op vs. clip-then-abs; sign of the clamped value equals
    # sign of x since the clamp bounds are symmetric).
    xbits = pltpu.bitcast(x, jnp.uint32)
    sign_bit = xbits & jnp.uint32(0x80000000)
    xa = jnp.minimum(
        pltpu.bitcast(xbits & jnp.uint32(0x7FFFFFFF), jnp.float32), 1.0)

    # b-bit uniform code, then keep the top `num_terms` power-of-two terms
    # (pure integer arithmetic, no selects).
    q = jnp.round(xa * levels).astype(jnp.int32)
    kept = jnp.zeros_like(q)
    cnt = jnp.zeros_like(q)
    for bit in range(b - 1, -1, -1):  # MSB -> LSB, static unroll (b <= 4)
        bit_i = (q >> bit) & 1
        take = bit_i & (cnt < num_terms).astype(jnp.int32)
        kept = kept | (take << bit)
        cnt = cnt + take

    val = kept.astype(jnp.float32) * out_scale          # >= 0 (alpha > 0)
    signed = pltpu.bitcast(val, jnp.uint32) | sign_bit  # re-apply sign bit
    o_ref[...] = pltpu.bitcast(signed, jnp.float32).astype(o_ref.dtype)


def weight_quantize_fn_forward(weight, wgt_alpha, num_terms, *, w_bit=4):
    """JAX/Pallas equivalent of weight_quantize_fn(w_bit).forward(weight, num_terms)."""
    assert (0 < w_bit <= 5) or w_bit == 32
    b = w_bit - 1  # matches module: self.w_bit = w_bit - 1
    levels = (1 << b) - 1

    orig_shape = weight.shape
    orig_dtype = weight.dtype
    n = weight.size

    # --- lane-dense slab layout: (rows, 512), rows a multiple of row_block ---
    rows = _round_up(-(-n // _LANES), 8)      # ceil(n/LANES), sublane aligned
    if rows <= _ROW_BLOCK_CAP:
        row_block = rows
    else:
        # Largest block whose row padding stays small (<= ~6% or <= 56 rows).
        row_block = 64
        for rb in (_ROW_BLOCK_CAP, 256, 128, 64):
            waste = _round_up(rows, rb) - rows
            if waste <= max(rows // 16, 56):
                row_block = rb
                break
        rows = _round_up(rows, row_block)
    n_pad = rows * _LANES
    n_blocks = rows // row_block

    flat = weight.reshape(-1)
    if n_pad != n:
        flat = jnp.pad(flat, (0, n_pad - n))  # zero pad: contributes 0 to s1/s2
    w2d = flat.reshape(rows, _LANES)          # native dtype, no f32 copy in HBM

    # --- pass 1: gridded single-sweep stats (accumulator output) ---
    s1p, s2p = pl.pallas_call(
        _stats_kernel,
        out_shape=(jax.ShapeDtypeStruct((1, _LANES), jnp.float32),
                   jax.ShapeDtypeStruct((1, _LANES), jnp.float32)),
        grid_spec=pltpu.PrefetchScalarGridSpec(
            num_scalar_prefetch=0,
            grid=(n_blocks,),
            in_specs=[pl.BlockSpec((row_block, _LANES), lambda i: (i, 0))],
            out_specs=[pl.BlockSpec((1, _LANES), lambda i: (0, 0)),
                       pl.BlockSpec((1, _LANES), lambda i: (0, 0))],
        ),
        compiler_params=pltpu.CompilerParams(dimension_semantics=("arbitrary",)),
    )(w2d)

    # --- fold all scalars once (divides happen on scalars, not per element) ---
    s1 = jnp.sum(s1p)
    s2 = jnp.sum(s2p)
    nf = jnp.float32(n)
    mean = s1 / nf
    var = (s2 - s1 * s1 / nf) / (nf - 1.0)    # unbiased, single-pass form
    std = jnp.sqrt(var)
    alpha = jnp.asarray(wgt_alpha, dtype=jnp.float32)
    inv = 1.0 / (std * alpha)                 # std==0 -> inf, matching torch
    out_scale = alpha / levels                # alpha * sf
    scalars = jnp.stack([mean, inv, out_scale]).astype(jnp.float32)
    nt_arr = jnp.asarray([num_terms], dtype=jnp.int32)

    # --- pass 2: pipelined elementwise quantization (parallel grid axis) ---
    out2d = pl.pallas_call(
        functools.partial(_quant_kernel, b=b),
        out_shape=jax.ShapeDtypeStruct((rows, _LANES), orig_dtype),
        grid_spec=pltpu.PrefetchScalarGridSpec(
            num_scalar_prefetch=2,
            grid=(n_blocks,),
            in_specs=[pl.BlockSpec((row_block, _LANES), lambda i, sc, nt: (i, 0))],
            out_specs=pl.BlockSpec((row_block, _LANES), lambda i, sc, nt: (i, 0)),
        ),
        compiler_params=pltpu.CompilerParams(dimension_semantics=("parallel",)),
    )(scalars, nt_arr, w2d)

    out_flat = out2d.reshape(-1)
    if n_pad != n:
        out_flat = out_flat[:n]
    return out_flat.reshape(orig_shape)


def _reference(weight, alpha, num_terms, w_bit):
    """Pure-JAX reference (two-pass stats, select-based quantization)."""
    b = w_bit - 1
    w = weight.astype(jnp.float32)
    mean = jnp.mean(w)
    std = jnp.std(w, ddof=1)
    x = (w - mean) / std / alpha
    xc = jnp.clip(x, -1.0, 1.0)
    sign = jnp.sign(xc)
    xa = jnp.abs(xc)
    levels = (1 << b) - 1
    q = jnp.round(xa * levels).astype(jnp.int32)
    kept = jnp.zeros_like(q)
    cnt = jnp.zeros_like(q)
    for bit in range(b - 1, -1, -1):
        take = jnp.logical_and(((q >> bit) & 1) == 1, cnt < num_terms)
        kept = kept + jnp.where(take, 1 << bit, 0)
        cnt = cnt + jnp.where(take, 1, 0)
    return kept.astype(jnp.float32) / levels * sign * alpha


if __name__ == "__main__":
    key = jax.random.PRNGKey(0)
    # small conv-like weight, OIHW: out=8, in=4, k=3x3
    weight = jax.random.normal(key, (8, 4, 3, 3), dtype=jnp.float32)

    w_bit = 4          # module: assert w_bit <= 5 and w_bit > 0
    wgt_alpha = 3.0    # Parameter(torch.tensor(3.0)) deterministic init
    num_terms = 2

    out = weight_quantize_fn_forward(weight, wgt_alpha, num_terms, w_bit=w_bit)
    out = jax.block_until_ready(out)

    ref = _reference(weight, wgt_alpha, num_terms, w_bit)
    assert out.shape == weight.shape and out.dtype == jnp.float32
    assert jnp.max(jnp.abs(out - ref)) < 1e-5

    print("KERNEL_OK")
</pallas_src>

<mosaic_0001>
module attributes {stable_mosaic.version = 11 : i64} {
  func.func @_stats_kernel(%arg0: i32, %arg1: memref<8x512xf32, #tpu.memory_space<vmem>>, %arg2: memref<1x512xf32, #tpu.memory_space<vmem>>, %arg3: memref<1x512xf32, #tpu.memory_space<vmem>>) attributes {dimension_semantics = [#tpu.dimension_semantics<arbitrary>], iteration_bounds = array<i64: 1>, scalar_prefetch = 0 : i64, scratch_operands = 0 : i64, tpu.core_type = #tpu.core_type<tc>, window_params = [{transform_indices = @transform_0, window_bounds = array<i64: 8, 512>}, {pipeline_mode = #tpu.pipeline_mode<synchronous>, transform_indices = @transform_1, window_bounds = array<i64: 1, 512>}, {pipeline_mode = #tpu.pipeline_mode<synchronous>, transform_indices = @transform_2, window_bounds = array<i64: 1, 512>}]} {
    %c0_i32 = arith.constant 0 : i32
    %0 = arith.cmpi eq, %arg0, %c0_i32 : i32
    %1 = arith.extui %0 : i1 to i32
    %c0_i32_0 = arith.constant 0 : i32
    %2 = arith.cmpi ne, %1, %c0_i32_0 : i32
    scf.if %2 {
      %cst_11 = arith.constant 0.000000e+00 : f32
      %15 = vector.broadcast %cst_11 : f32 to vector<1x512xf32>
      %c0_12 = arith.constant 0 : index
      %c0_13 = arith.constant 0 : index
      %16 = vector.load %arg2[%c0_12, %c0_13] : memref<1x512xf32, #tpu.memory_space<vmem>>, vector<1x512xf32>
      tpu.vector_store %arg2[%c0_12, %c0_13], %15 {strides = array<i32>} : memref<1x512xf32, #tpu.memory_space<vmem>>, vector<1x512xf32>,
      %cst_14 = arith.constant 0.000000e+00 : f32
      %17 = vector.broadcast %cst_14 : f32 to vector<1x512xf32>
      %c0_15 = arith.constant 0 : index
      %c0_16 = arith.constant 0 : index
      %18 = vector.load %arg3[%c0_15, %c0_16] : memref<1x512xf32, #tpu.memory_space<vmem>>, vector<1x512xf32>
      tpu.vector_store %arg3[%c0_15, %c0_16], %17 {strides = array<i32>} : memref<1x512xf32, #tpu.memory_space<vmem>>, vector<1x512xf32>,
    } else {
    }
    %c0 = arith.constant 0 : index
    %c0_1 = arith.constant 0 : index
    %3 = vector.load %arg1[%c0, %c0_1] : memref<8x512xf32, #tpu.memory_space<vmem>>, vector<8x512xf32>
    %c0_2 = arith.constant 0 : index
    %c0_3 = arith.constant 0 : index
    %4 = vector.load %arg2[%c0_2, %c0_3] : memref<1x512xf32, #tpu.memory_space<vmem>>, vector<1x512xf32>
    %cst = arith.constant dense<0.000000e+00> : vector<512xf32>
    %5 = vector.multi_reduction <add>, %3, %cst [0] : vector<8x512xf32> to vector<512xf32>
    %6 = vector.shape_cast %5 : vector<512xf32> to vector<1x512xf32>
    %7 = arith.addf %4, %6 : vector<1x512xf32>
    %c0_4 = arith.constant 0 : index
    %c0_5 = arith.constant 0 : index
    %8 = vector.load %arg2[%c0_4, %c0_5] : memref<1x512xf32, #tpu.memory_space<vmem>>, vector<1x512xf32>
    tpu.vector_store %arg2[%c0_4, %c0_5], %7 {strides = array<i32>} : memref<1x512xf32, #tpu.memory_space<vmem>>, vector<1x512xf32>,
    %c0_6 = arith.constant 0 : index
    %c0_7 = arith.constant 0 : index
    %9 = vector.load %arg3[%c0_6, %c0_7] : memref<1x512xf32, #tpu.memory_space<vmem>>, vector<1x512xf32>
    %10 = arith.mulf %3, %3 : vector<8x512xf32>
    %cst_8 = arith.constant dense<0.000000e+00> : vector<512xf32>
    %11 = vector.multi_reduction <add>, %10, %cst_8 [0] : vector<8x512xf32> to vector<512xf32>
    %12 = vector.shape_cast %11 : vector<512xf32> to vector<1x512xf32>
    %13 = arith.addf %9, %12 : vector<1x512xf32>
    %c0_9 = arith.constant 0 : index
    %c0_10 = arith.constant 0 : index
    %14 = vector.load %arg3[%c0_9, %c0_10] : memref<1x512xf32, #tpu.memory_space<vmem>>, vector<1x512xf32>
    tpu.vector_store %arg3[%c0_9, %c0_10], %13 {strides = array<i32>} : memref<1x512xf32, #tpu.memory_space<vmem>>, vector<1x512xf32>,
    return
  }
  func.func @transform_0(%arg0: i32) -> (i32, i32) {
    %c0_i32 = arith.constant 0 : i32
    %c0_i32_0 = arith.constant 0 : i32
    return %arg0, %c0_i32 : i32, i32
  }
  func.func @transform_1(%arg0: i32) -> (i32, i32) {
    %c0_i32 = arith.constant 0 : i32
    %c0_i32_0 = arith.constant 0 : i32
    %c0_i32_1 = arith.constant 0 : i32
    return %c0_i32, %c0_i32_0 : i32, i32
  }
  func.func @transform_2(%arg0: i32) -> (i32, i32) {
    %c0_i32 = arith.constant 0 : i32
    %c0_i32_0 = arith.constant 0 : i32
    %c0_i32_1 = arith.constant 0 : i32
    return %c0_i32, %c0_i32_0 : i32, i32
  }
}

</mosaic_0001>

<bundles_post_ra>
// kernel: tpu_custom_call.1
= control target key start
LH: loop header
LB: loop body
LE: loop exit
PB: predicated region body
PF: predicated region fallthrough
CT: control target
= control target key end

     0   :  { %8 = vsyncpa [#allocation3], 0  ;;  %s307_s0 = inlined_call_operand.hbm [shape: f32[8,512], index: 0, kind: input, shape index: {}]   ;;  %s308_s1 = inlined_call_operand.hbm [shape: f32[1,512], index: 1, kind: output, shape index: {0}]   ;;  %s309_s2 = inlined_call_operand.hbm [shape: f32[1,512], index: 2, kind: output, shape index: {1}]  }
   0x1   :  { %9 = vsyncpa [#allocation4], 0 }
   0x2   :  { %10 = vsyncpa [#allocation7], 0  ;;  %s258_s9 = smov [#allocation2]  }
   0x3   :  { %s17_s10 = sshll.u32 %s258_s9, 4  ;;  %s18_s10 = int_to_ptr.vmem [resolvable:$true] %s17_s10 }
   0x4   :  { %s200_s11 = scalar_lea.vmem %s18_s10, 512  ;;  %p205_p1 = scmp.lt.s32.totalorder %s18_s10, %s18_s10 }
   0x5   :  { %p201_p0 = scmp.ne.s32.totalorder %s18_s10, %s200_s11  ;;  %p206_p2 = scmp.lt.s32.totalorder %s200_s11, %s200_s11 }
   0x7   :  { %p207_p3 = por %p206_p2, %p205_p1 }
   0x9   :  { %p208_p4 = pnand %p207_p3, %p201_p0 }
   0xb   :  { %211 = shalt.err (!%p208_p4)
}
   0xc   :  { %20 = dma.hbm_to_vmem [thread:$0]  %s307_s0, 512, %s18_s10, [#allocation3]  }
   0xd   :  { %252 = dma.done.wait [#allocation3], 512  }
   0xe   :  { %253 = vsyncadd [#allocation3], 4294966784  ;;  %v28_v0 = vlaneseq  ;;  %v259_v1 = vmov 1966171168   ;;  %v260_v4 = vmov 0.0   ;;  %v34_v8 = vld [vmem:[#allocation2] sm:$0xff] }
   0xf   :  { %v70_v2 = vunpack.c.l.s4 %v259_v1  ;;  %v35_v9 = vld [vmem:[#allocation2 + $0x8] sm:$0xff]  ;;  %v36_v10 = vld [vmem:[#allocation2 + $0x10] sm:$0xff]  ;;  %v37_v11 = vld [vmem:[#allocation2 + $0x18] sm:$0xff]  ;;  %v39_v12 = vrot.slane %v34_v8, 4  ;;  %v99_v15 = vmul.f32 %v34_v8, %v34_v8  ;;  %s261_s0 = smov [#allocation5]   ;;  %s262_s15 = smov [#allocation6]  }
  0x10   :  { %vm281_vm0 = vcmp.lt.s32.totalorder %v28_v0, 512  ;;  %v73_v6 = vshrl.u32 %v28_v0, 7  ;;  %v45_v13 = vrot.slane %v35_v9, 4  ;;  %v51_v14 = vrot.slane %v36_v10, 4  ;;  %s164_s14 = sshll.u32 %s261_s0, 4  ;;  %s174_s16 = sshll.u32 %s262_s15, 4  ;;  %s165_s14 = int_to_ptr.vmem [resolvable:$true] %s164_s14  ;;  %s175_s16 = int_to_ptr.vmem [resolvable:$true] %s174_s16 }
  0x11   :  { %32 = vst.msk [vmem:[#allocation5] sm:$0xf] %vm281_vm0, %v260_v4  ;;  %v71_v5 = vunpack.c.0.s8 %v70_v2  ;;  %33 = vst.msk [vmem:[#allocation6] sm:$0xf] %vm281_vm0, %v260_v4  ;;  %v57_v16 = vrot.slane %v37_v11, 4  ;;  %v100_v17 = vmul.f32 %v35_v9, %v35_v9  ;;  %v101_v18 = vmul.f32 %v36_v10, %v36_v10  ;;  %s212_s17 = scalar_lea.vmem %s165_s14, 64  ;;  %p217_p6 = scmp.lt.s32.totalorder %s165_s14, %s165_s14 }
  0x12   :  { %v102_v19 = vmul.f32 %v37_v11, %v37_v11  ;;  %v40_v20 = vadd.f32 %v39_v12, %v34_v8  ;;  %v46_v21 = vadd.f32 %v45_v13, %v35_v9  ;;  %v52_v22 = vadd.f32 %v51_v14, %v36_v10  ;;  %p213_p5 = scmp.ne.s32.totalorder %s165_s14, %s212_s17  ;;  %p218_p7 = scmp.lt.s32.totalorder %s212_s17, %s212_s17 }
  0x13   :  { %v289_v7 = vsub.s32 %v71_v5, %v73_v6  ;;  %v103_v23 = vrot.slane %v99_v15, 4  ;;  %v58_v24 = vadd.f32 %v57_v16, %v37_v11  ;;  %v109_v25 = vrot.slane %v100_v17, 4 }
  0x14   :  { %v115_v26 = vrot.slane %v101_v18, 4  ;;  %v121_v27 = vrot.slane %v102_v19, 4  ;;  %v41_v28 = vrot.slane %v40_v20, 2  ;;  %v47_v29 = vrot.slane %v46_v21, 2  ;;  %p219_p8 = por %p218_p7, %p217_p6 }
  0x15   :  { %v53_v30 = vrot.slane %v52_v22, 2  ;;  %v104_v31 = vadd.f32 %v103_v23, %v99_v15  ;;  %v59_v32 = vrot.slane %v58_v24, 2  ;;  %v110_v33 = vadd.f32 %v109_v25, %v100_v17 }
  0x16   :  { %v116_v34 = vadd.f32 %v115_v26, %v101_v18  ;;  %v122_v35 = vadd.f32 %v121_v27, %v102_v19  ;;  %v42_v36 = vadd.f32 %v41_v28, %v40_v20  ;;  %v48_v37 = vadd.f32 %v47_v29, %v46_v21  ;;  %p220_p9 = pnand %p219_p8, %p213_p5 }
  0x17   :  { %v54_v38 = vadd.f32 %v53_v30, %v52_v22  ;;  %v105_v39 = vrot.slane %v104_v31, 2  ;;  %v60_v40 = vadd.f32 %v59_v32, %v58_v24  ;;  %v111_v41 = vrot.slane %v110_v33, 2 }
  0x18   :  { %v117_v42 = vrot.slane %v116_v34, 2  ;;  %v123_v43 = vrot.slane %v122_v35, 2  ;;  %v43_v44 = vrot.slane %v42_v36, 1  ;;  %v49_v45 = vrot.slane %v48_v37, 1  ;;  %v38_v11 = vld [vmem:[#allocation5] sm:$0xf] }
  0x19   :  { %v55_v46 = vrot.slane %v54_v38, 1  ;;  %v106_v47 = vadd.f32 %v105_v39, %v104_v31  ;;  %v61_v48 = vrot.slane %v60_v40, 1  ;;  %v112_v49 = vadd.f32 %v111_v41, %v110_v33  ;;  %v98_v14 = vld [vmem:[#allocation6] sm:$0xf] }
  0x1a   :  { %v118_v50 = vadd.f32 %v117_v42, %v116_v34  ;;  %v124_v51 = vadd.f32 %v123_v43, %v122_v35  ;;  %v44_v52 = vadd.f32 %v43_v44, %v42_v36  ;;  %v50_v53 = vadd.f32 %v49_v45, %v48_v37 }
  0x1b   :  { %v56_v54 = vadd.f32 %v55_v46, %v54_v38  ;;  %v107_v55 = vrot.slane %v106_v47, 1  ;;  %v62_v56 = vadd.f32 %v61_v48, %v60_v40  ;;  %v113_v57 = vrot.slane %v112_v49, 1 }
  0x1c   :  { %v119_v58 = vrot.slane %v118_v50, 1  ;;  %v125_v59 = vrot.slane %v124_v51, 1  ;;  %v67_v60 = vcombine.low %v44_v52, %v50_v53 }
  0x1d   :  { %v108_v61 = vadd.f32 %v107_v55, %v106_v47  ;;  %v68_v62 = vcombine.low %v56_v54, %v62_v56  ;;  %v114_v63 = vadd.f32 %v113_v57, %v112_v49 }
  0x1e   :  { %v120_v0 = vadd.f32 %v119_v58, %v118_v50  ;;  %v126_v1 = vadd.f32 %v125_v59, %v124_v51  ;;  %v75_v2 = vrot.slane %v67_v60, %v289_v7 }
  0x1f   :  { %v82_v4 = vrot.slane %v68_v62, %v289_v7  ;;  %v131_v5 = vcombine.low %v108_v61, %v114_v63 }
  0x20   :  { %v132_v6 = vcombine.low %v120_v0, %v126_v1 }
  0x21   :  { %v83_v8 = vcombine.low %v75_v2, %v82_v4  ;;  %v139_v9 = vrot.slane %v131_v5, %v289_v7 }
  0x22   :  { %v146_v10 = vrot.slane %v132_v6, %v289_v7 }
  0x23   :  { %v90_v12 = vrot.slane %v83_v8, %v289_v7 }
  0x24   :  { %v147_v13 = vcombine.low %v139_v9, %v146_v10 }
  0x25   :  { %v92_v15 = vadd.f32 %v90_v12, %v38_v11 }
  0x26   :  { %v154_v16 = vrot.slane %v147_v13, %v289_v7 }
  0x27   :  { %97 = vst.msk [vmem:[#allocation5] sm:$0xf] %vm281_vm0, %v92_v15 }
  0x28   :  { %v156_v17 = vadd.f32 %v154_v16, %v98_v14 }
  0x29   :  { %223 = shalt.err (!%p220_p9)
}
  0x2a   :  { %167 = dma.vmem_to_hbm [thread:$0]  %s165_s14, 64, %s308_s1, [#allocation4]   ;;  %157 = vst.msk [vmem:[#allocation6] sm:$0xf] %vm281_vm0, %v156_v17 }
  0x2b   :  { %s232_s20 = scalar_lea.vmem %s175_s16, 64  ;;  %p237_p11 = scmp.lt.s32.totalorder %s175_s16, %s175_s16 }
  0x2c   :  { %p233_p10 = scmp.ne.s32.totalorder %s175_s16, %s232_s20  ;;  %p238_p12 = scmp.lt.s32.totalorder %s232_s20, %s232_s20 }
  0x2e   :  { %p239_p13 = por %p238_p12, %p237_p11 }
  0x30   :  { %p240_p0 = pnand %p239_p13, %p233_p10 }
  0x32   :  { %243 = shalt.err (!%p240_p0)
}
  0x33   :  { %177 = dma.vmem_to_hbm [thread:$0]  %s175_s16, 64, %s309_s2, [#allocation7]  }
  0x34   :  { %254 = dma.done.wait [#allocation4], 64  }
  0x35   :  { %255 = vsyncadd [#allocation4], 4294967232 }
  0x36   :  { %256 = dma.done.wait [#allocation7], 64  }
  0x37   :  { %257 = vsyncadd [#allocation7], 4294967232 }
  0x38   :  { %184 = vsyncpa [#allocation3], 1 }
  0x39   :  { %185 = vsyncpa [#allocation4], 1 }
  0x3a   :  { %186 = vsyncpa [#allocation7], 1 }

</bundles_post_ra>
